<compile_context>
chip_gen: v7x
topology: tpu7x:2x2x1
jax: 0.10.0
libtpu: 0.0.40
codegen_flags: <defaults>
</compile_context>

<pallas_src>
import jax
import jax.numpy as jnp
from jax import lax
from jax.experimental import pallas as pl
from jax.experimental.pallas import tpu as pltpu


def _make_pair_afm_kernel(block_b: int, K: int, gather_unroll: int):
    """Build the kernel with block_b / K baked in as static constants."""

    def kernel(u_idx_ref, i_idx_ref, j_idx_ref,     # scalar prefetch (SMEM, int32, shape [B])
               user_ref, item_ref,                  # VMEM-resident embedding tables
               wT_ref, lin_b_ref, h_ref,            # [F,K+1] VMEM, [K] SMEM, [K] SMEM
               pi_ref, pj_ref,                      # outputs [block_b, 1]
               eu_buf, ei_buf, ej_buf):             # VMEM gather buffers [block_b, F]
        base = pl.program_id(0) * block_b

        # ---- gather: dynamic-row VMEM loads from the resident tables ----
        def gather(r, carry):
            eu_buf[pl.ds(r, 1), :] = user_ref[pl.ds(u_idx_ref[base + r], 1), :]
            ei_buf[pl.ds(r, 1), :] = item_ref[pl.ds(i_idx_ref[base + r], 1), :]
            ej_buf[pl.ds(r, 1), :] = item_ref[pl.ds(j_idx_ref[base + r], 1), :]
            return carry

        lax.fori_loop(0, block_b, gather, 0, unroll=gather_unroll)

        # ---- compute: one MXU matmul per branch + cheap VPU combine ----
        eu = eu_buf[...]                                     # [bt, F] f32
        wT = wT_ref[...]                                     # [F, K+1]: cols 0..K-1 lin_w, col K pred_w
        lin_b = [lin_b_ref[k] for k in range(K)]             # scalars from SMEM
        h_sc = [h_ref[k] for k in range(K)]                  # scalars from SMEM

        def branch(ex):
            fm = eu * ex                                     # [bt, F]
            z = jnp.dot(fm, wT, preferred_element_type=jnp.float32)   # [bt, K+1] (MXU)
            att = jnp.zeros((block_b, 1), jnp.float32)
            for k in range(K):                               # K == 2, static unroll
                att = att + jnp.maximum(z[:, k:k + 1] + lin_b[k], 0.0) * h_sc[k]
            return att * z[:, K:K + 1]                       # [bt, 1]; bias added in wrapper

        pi_ref[...] = branch(ei_buf[...])
        pj_ref[...] = branch(ej_buf[...])

    return kernel


def _pick_block_b(B, F, *, scratch_budget_bytes=4 << 20):
    # Cap block_b so the 3 [block_b, F] f32 gather buffers stay within budget,
    # and prefer a tiling with >= 2 grid blocks (v7x has 2 TensorCores).
    cap = max(8, scratch_budget_bytes // (3 * F * 4))
    best_single = None
    for cand in (1024, 512, 256, 128, 64, 32, 16, 8):
        if cand > cap or B % cand != 0:
            continue
        if B // cand >= 2:
            return cand
        if best_single is None:
            best_single = cand
    return best_single if best_single is not None else B


def pair_afm_forward(params, u, i, j, *, block_b=None):
    """Returns (pred_i, pred_j), each shape [B] float32."""
    embed_user = params["embed_user"].astype(jnp.float32)
    embed_item = params["embed_item"].astype(jnp.float32)
    B = u.shape[0]
    U, F = embed_user.shape
    I_ = embed_item.shape[0]
    K = params["lin_w"].shape[0]

    if block_b is None:
        block_b = _pick_block_b(B, F)
    assert B % block_b == 0, "block_b must divide B"
    num_blocks = B // block_b

    u_idx = u.astype(jnp.int32)
    i_idx = i.astype(jnp.int32)
    j_idx = j.astype(jnp.int32)

    # Dense weights packed column-wise: cols 0..K-1 are lin_w rows, col K is pred_w.
    wT = jnp.concatenate(
        [params["lin_w"].astype(jnp.float32),
         params["pred_w"].astype(jnp.float32)], axis=0).T          # [F, K+1]
    lin_b = params["lin_b"].astype(jnp.float32)                    # [K]
    h_vec = params["h"].reshape(-1).astype(jnp.float32)            # [K]

    # ---- explicit VMEM budget (tables are VMEM-resident) ----
    table_bytes = 4 * (U * F + I_ * F)
    w_bytes = 4 * F * (K + 1)
    scratch_bytes = 3 * block_b * F * 4
    out_bytes = 2 * 2 * block_b * 4                                # 2 outputs, double-buffered
    vmem_needed = 2 * (table_bytes + w_bytes) + scratch_bytes + out_bytes + (2 << 20)
    assert vmem_needed <= (40 << 20), (
        "embedding tables too large for the VMEM-resident gather path "
        "(TODO: HBM-side batched DMA gather fallback)")
    vmem_limit = int(min(max(vmem_needed, 16 << 20), 40 << 20))

    gather_unroll = 8 if block_b % 8 == 0 else 1
    kernel = _make_pair_afm_kernel(block_b, K, gather_unroll)

    grid_spec = pltpu.PrefetchScalarGridSpec(
        num_scalar_prefetch=3,                                     # u_idx, i_idx, j_idx -> SMEM
        grid=(num_blocks,),
        in_specs=[
            pl.BlockSpec((U, F), lambda b, *_: (0, 0)),            # embed_user, VMEM-resident
            pl.BlockSpec((I_, F), lambda b, *_: (0, 0)),           # embed_item, VMEM-resident
            pl.BlockSpec((F, K + 1), lambda b, *_: (0, 0)),        # packed weights
            pl.BlockSpec(memory_space=pltpu.MemorySpace.SMEM),     # lin_b scalars
            pl.BlockSpec(memory_space=pltpu.MemorySpace.SMEM),     # h scalars
        ],
        out_specs=[
            pl.BlockSpec((block_b, 1), lambda b, *_: (b, 0)),
            pl.BlockSpec((block_b, 1), lambda b, *_: (b, 0)),
        ],
        scratch_shapes=[
            pltpu.VMEM((block_b, F), jnp.float32),                 # eu gather buffer
            pltpu.VMEM((block_b, F), jnp.float32),                 # ei gather buffer
            pltpu.VMEM((block_b, F), jnp.float32),                 # ej gather buffer
        ],
    )

    pi, pj = pl.pallas_call(
        kernel,
        grid_spec=grid_spec,
        out_shape=(jax.ShapeDtypeStruct((B, 1), jnp.float32),
                   jax.ShapeDtypeStruct((B, 1), jnp.float32)),
        compiler_params=pltpu.CompilerParams(
            dimension_semantics=("parallel",),
            vmem_limit_bytes=vmem_limit),
    )(u_idx, i_idx, j_idx, embed_user, embed_item, wT, lin_b, h_vec)

    # Hoisted bias term:  (u_bias + x_bias + bias_) * sum(pred_w)   (exact algebra,
    # since the per-row bias is a scalar broadcast over the F factors).
    pw_sum = jnp.sum(params["pred_w"])
    ub = params["u_bias"][u][:, 0]
    bias_i = (ub + params["i_bias"][i][:, 0] + params["bias_"][0]) * pw_sum
    bias_j = (ub + params["i_bias"][j][:, 0] + params["bias_"][0]) * pw_sum

    return pi[:, 0] + bias_i, pj[:, 0] + bias_j


def init_params(key, user_num, item_num, factors, K=2):
    ks = jax.random.split(key, 6)
    # mirrors PairAFM._init_weights (and PyTorch defaults for lin.bias / h)
    embed_user = 0.01 * jax.random.normal(ks[0], (user_num, factors), jnp.float32)
    embed_item = 0.01 * jax.random.normal(ks[1], (item_num, factors), jnp.float32)
    lin_w = 0.01 * jax.random.normal(ks[2], (K, factors), jnp.float32)
    bound = 1.0 / jnp.sqrt(factors)
    lin_b = jax.random.uniform(ks[3], (K,), jnp.float32, -bound, bound)
    h = jax.random.uniform(ks[4], (K, 1), jnp.float32)          # torch.rand(K, 1)
    # xavier_normal_ for prediction weight [1, factors]
    xav_std = jnp.sqrt(2.0 / (factors + 1))
    pred_w = xav_std * jax.random.normal(ks[5], (1, factors), jnp.float32)
    return {
        "embed_user": embed_user,
        "embed_item": embed_item,
        "u_bias": jnp.zeros((user_num, 1), jnp.float32),
        "i_bias": jnp.zeros((item_num, 1), jnp.float32),
        "bias_": jnp.zeros((1,), jnp.float32),
        "lin_w": lin_w,
        "lin_b": lin_b,
        "h": h,
        "pred_w": pred_w,
    }


def _reference(params, u, i, j):
    """Faithful (matmul-form) reference of the original PyTorch forward."""
    eu = params["embed_user"][u]
    ei = params["embed_item"][i]
    ej = params["embed_item"][j]

    def branch(e_item, item_idx):
        fm = eu * e_item
        z = jnp.maximum(fm @ params["lin_w"].T + params["lin_b"], 0.0)
        att = z @ params["h"]
        fm = fm * att + (params["u_bias"][u] + params["i_bias"][item_idx]
                         + params["bias_"])
        return (fm @ params["pred_w"].T).reshape(-1)

    return branch(ei, i), branch(ej, j)


if __name__ == "__main__":
    user_num, item_num, factors, K = 64, 128, 32, 2
    B = 8

    key = jax.random.PRNGKey(0)
    pkey, ukey, ikey, jkey = jax.random.split(key, 4)
    params = init_params(pkey, user_num, item_num, factors, K)

    u = jax.random.randint(ukey, (B,), 0, user_num, jnp.int32)
    i = jax.random.randint(ikey, (B,), 0, item_num, jnp.int32)
    j = jax.random.randint(jkey, (B,), 0, item_num, jnp.int32)

    pred_i, pred_j = jax.block_until_ready(pair_afm_forward(params, u, i, j))

    ref_i, ref_j = _reference(params, u, i, j)
    assert pred_i.shape == (B,) and pred_j.shape == (B,)
    assert jnp.allclose(pred_i, ref_i, atol=1e-5, rtol=1e-5)
    assert jnp.allclose(pred_j, ref_j, atol=1e-5, rtol=1e-5)

    print("KERNEL_OK")
</pallas_src>

<mosaic_0001>
module attributes {stable_mosaic.version = 11 : i64} {
  func.func @kernel(%arg0: i32, %arg1: memref<8xi32, #tpu.memory_space<smem>>, %arg2: memref<8xi32, #tpu.memory_space<smem>>, %arg3: memref<8xi32, #tpu.memory_space<smem>>, %arg4: memref<64x32xf32, #tpu.memory_space<vmem>>, %arg5: memref<128x32xf32, #tpu.memory_space<vmem>>, %arg6: memref<32x3xf32, #tpu.memory_space<vmem>>, %arg7: memref<2xf32, #tpu.memory_space<smem>>, %arg8: memref<2xf32, #tpu.memory_space<smem>>, %arg9: memref<8x1xf32, #tpu.memory_space<vmem>>, %arg10: memref<8x1xf32, #tpu.memory_space<vmem>>, %arg11: memref<8x32xf32, #tpu.memory_space<vmem>>, %arg12: memref<8x32xf32, #tpu.memory_space<vmem>>, %arg13: memref<8x32xf32, #tpu.memory_space<vmem>>) attributes {dimension_semantics = [#tpu.dimension_semantics<parallel>], iteration_bounds = array<i64: 1>, scalar_prefetch = 3 : i64, scratch_operands = 3 : i64, tpu.core_type = #tpu.core_type<tc>, window_params = [{pipeline_mode = #tpu.pipeline_mode<synchronous>, transform_indices = @transform_0, window_bounds = array<i64: 64, 32>}, {pipeline_mode = #tpu.pipeline_mode<synchronous>, transform_indices = @transform_1, window_bounds = array<i64: 128, 32>}, {pipeline_mode = #tpu.pipeline_mode<synchronous>, transform_indices = @transform_2, window_bounds = array<i64: 32, 3>}, {transform_indices = @transform_3, window_bounds = array<i64: 2>}, {transform_indices = @transform_4, window_bounds = array<i64: 2>}, {transform_indices = @transform_5, window_bounds = array<i64: 8, 1>}, {transform_indices = @transform_6, window_bounds = array<i64: 8, 1>}]} {
    %c8_i32 = arith.constant 8 : i32
    %0 = arith.muli %arg0, %c8_i32 : i32
    %c0_i32 = arith.constant 0 : i32
    %1 = arith.addi %0, %c0_i32 : i32
    %2 = arith.index_cast %1 : i32 to index
    %3 = memref.load %arg1[%2] : memref<8xi32, #tpu.memory_space<smem>>
    %4 = arith.index_cast %3 : i32 to index
    %c0 = arith.constant 0 : index
    %5 = vector.load %arg4[%4, %c0] : memref<64x32xf32, #tpu.memory_space<vmem>>, vector<1x32xf32>
    %6 = arith.index_cast %c0_i32 : i32 to index
    %c0_0 = arith.constant 0 : index
    %7 = vector.load %arg11[%6, %c0_0] : memref<8x32xf32, #tpu.memory_space<vmem>>, vector<1x32xf32>
    tpu.vector_store %arg11[%6, %c0_0], %5 {strides = array<i32>} : memref<8x32xf32, #tpu.memory_space<vmem>>, vector<1x32xf32>,
    %8 = arith.addi %0, %c0_i32 : i32
    %9 = arith.index_cast %8 : i32 to index
    %10 = memref.load %arg2[%9] : memref<8xi32, #tpu.memory_space<smem>>
    %11 = arith.index_cast %10 : i32 to index
    %c0_1 = arith.constant 0 : index
    %12 = vector.load %arg5[%11, %c0_1] : memref<128x32xf32, #tpu.memory_space<vmem>>, vector<1x32xf32>
    %13 = arith.index_cast %c0_i32 : i32 to index
    %c0_2 = arith.constant 0 : index
    %14 = vector.load %arg12[%13, %c0_2] : memref<8x32xf32, #tpu.memory_space<vmem>>, vector<1x32xf32>
    tpu.vector_store %arg12[%13, %c0_2], %12 {strides = array<i32>} : memref<8x32xf32, #tpu.memory_space<vmem>>, vector<1x32xf32>,
    %15 = arith.addi %0, %c0_i32 : i32
    %16 = arith.index_cast %15 : i32 to index
    %17 = memref.load %arg3[%16] : memref<8xi32, #tpu.memory_space<smem>>
    %18 = arith.index_cast %17 : i32 to index
    %c0_3 = arith.constant 0 : index
    %19 = vector.load %arg5[%18, %c0_3] : memref<128x32xf32, #tpu.memory_space<vmem>>, vector<1x32xf32>
    %20 = arith.index_cast %c0_i32 : i32 to index
    %c0_4 = arith.constant 0 : index
    %21 = vector.load %arg13[%20, %c0_4] : memref<8x32xf32, #tpu.memory_space<vmem>>, vector<1x32xf32>
    tpu.vector_store %arg13[%20, %c0_4], %19 {strides = array<i32>} : memref<8x32xf32, #tpu.memory_space<vmem>>, vector<1x32xf32>,
    %c1_i32 = arith.constant 1 : i32
    %22 = arith.addi %0, %c1_i32 : i32
    %23 = arith.index_cast %22 : i32 to index
    %24 = memref.load %arg1[%23] : memref<8xi32, #tpu.memory_space<smem>>
    %25 = arith.index_cast %24 : i32 to index
    %c0_5 = arith.constant 0 : index
    %26 = vector.load %arg4[%25, %c0_5] : memref<64x32xf32, #tpu.memory_space<vmem>>, vector<1x32xf32>
    %27 = arith.index_cast %c1_i32 : i32 to index
    %c0_6 = arith.constant 0 : index
    %28 = vector.load %arg11[%27, %c0_6] : memref<8x32xf32, #tpu.memory_space<vmem>>, vector<1x32xf32>
    tpu.vector_store %arg11[%27, %c0_6], %26 {strides = array<i32>} : memref<8x32xf32, #tpu.memory_space<vmem>>, vector<1x32xf32>,
    %29 = arith.addi %0, %c1_i32 : i32
    %30 = arith.index_cast %29 : i32 to index
    %31 = memref.load %arg2[%30] : memref<8xi32, #tpu.memory_space<smem>>
    %32 = arith.index_cast %31 : i32 to index
    %c0_7 = arith.constant 0 : index
    %33 = vector.load %arg5[%32, %c0_7] : memref<128x32xf32, #tpu.memory_space<vmem>>, vector<1x32xf32>
    %34 = arith.index_cast %c1_i32 : i32 to index
    %c0_8 = arith.constant 0 : index
    %35 = vector.load %arg12[%34, %c0_8] : memref<8x32xf32, #tpu.memory_space<vmem>>, vector<1x32xf32>
    tpu.vector_store %arg12[%34, %c0_8], %33 {strides = array<i32>} : memref<8x32xf32, #tpu.memory_space<vmem>>, vector<1x32xf32>,
    %36 = arith.addi %0, %c1_i32 : i32
    %37 = arith.index_cast %36 : i32 to index
    %38 = memref.load %arg3[%37] : memref<8xi32, #tpu.memory_space<smem>>
    %39 = arith.index_cast %38 : i32 to index
    %c0_9 = arith.constant 0 : index
    %40 = vector.load %arg5[%39, %c0_9] : memref<128x32xf32, #tpu.memory_space<vmem>>, vector<1x32xf32>
    %41 = arith.index_cast %c1_i32 : i32 to index
    %c0_10 = arith.constant 0 : index
    %42 = vector.load %arg13[%41, %c0_10] : memref<8x32xf32, #tpu.memory_space<vmem>>, vector<1x32xf32>
    tpu.vector_store %arg13[%41, %c0_10], %40 {strides = array<i32>} : memref<8x32xf32, #tpu.memory_space<vmem>>, vector<1x32xf32>,
    %c2_i32 = arith.constant 2 : i32
    %43 = arith.addi %0, %c2_i32 : i32
    %44 = arith.index_cast %43 : i32 to index
    %45 = memref.load %arg1[%44] : memref<8xi32, #tpu.memory_space<smem>>
    %46 = arith.index_cast %45 : i32 to index
    %c0_11 = arith.constant 0 : index
    %47 = vector.load %arg4[%46, %c0_11] : memref<64x32xf32, #tpu.memory_space<vmem>>, vector<1x32xf32>
    %48 = arith.index_cast %c2_i32 : i32 to index
    %c0_12 = arith.constant 0 : index
    %49 = vector.load %arg11[%48, %c0_12] : memref<8x32xf32, #tpu.memory_space<vmem>>, vector<1x32xf32>
    tpu.vector_store %arg11[%48, %c0_12], %47 {strides = array<i32>} : memref<8x32xf32, #tpu.memory_space<vmem>>, vector<1x32xf32>,
    %50 = arith.addi %0, %c2_i32 : i32
    %51 = arith.index_cast %50 : i32 to index
    %52 = memref.load %arg2[%51] : memref<8xi32, #tpu.memory_space<smem>>
    %53 = arith.index_cast %52 : i32 to index
    %c0_13 = arith.constant 0 : index
    %54 = vector.load %arg5[%53, %c0_13] : memref<128x32xf32, #tpu.memory_space<vmem>>, vector<1x32xf32>
    %55 = arith.index_cast %c2_i32 : i32 to index
    %c0_14 = arith.constant 0 : index
    %56 = vector.load %arg12[%55, %c0_14] : memref<8x32xf32, #tpu.memory_space<vmem>>, vector<1x32xf32>
    tpu.vector_store %arg12[%55, %c0_14], %54 {strides = array<i32>} : memref<8x32xf32, #tpu.memory_space<vmem>>, vector<1x32xf32>,
    %57 = arith.addi %0, %c2_i32 : i32
    %58 = arith.index_cast %57 : i32 to index
    %59 = memref.load %arg3[%58] : memref<8xi32, #tpu.memory_space<smem>>
    %60 = arith.index_cast %59 : i32 to index
    %c0_15 = arith.constant 0 : index
    %61 = vector.load %arg5[%60, %c0_15] : memref<128x32xf32, #tpu.memory_space<vmem>>, vector<1x32xf32>
    %62 = arith.index_cast %c2_i32 : i32 to index
    %c0_16 = arith.constant 0 : index
    %63 = vector.load %arg13[%62, %c0_16] : memref<8x32xf32, #tpu.memory_space<vmem>>, vector<1x32xf32>
    tpu.vector_store %arg13[%62, %c0_16], %61 {strides = array<i32>} : memref<8x32xf32, #tpu.memory_space<vmem>>, vector<1x32xf32>,
    %c3_i32 = arith.constant 3 : i32
    %64 = arith.addi %0, %c3_i32 : i32
    %65 = arith.index_cast %64 : i32 to index
    %66 = memref.load %arg1[%65] : memref<8xi32, #tpu.memory_space<smem>>
    %67 = arith.index_cast %66 : i32 to index
    %c0_17 = arith.constant 0 : index
    %68 = vector.load %arg4[%67, %c0_17] : memref<64x32xf32, #tpu.memory_space<vmem>>, vector<1x32xf32>
    %69 = arith.index_cast %c3_i32 : i32 to index
    %c0_18 = arith.constant 0 : index
    %70 = vector.load %arg11[%69, %c0_18] : memref<8x32xf32, #tpu.memory_space<vmem>>, vector<1x32xf32>
    tpu.vector_store %arg11[%69, %c0_18], %68 {strides = array<i32>} : memref<8x32xf32, #tpu.memory_space<vmem>>, vector<1x32xf32>,
    %71 = arith.addi %0, %c3_i32 : i32
    %72 = arith.index_cast %71 : i32 to index
    %73 = memref.load %arg2[%72] : memref<8xi32, #tpu.memory_space<smem>>
    %74 = arith.index_cast %73 : i32 to index
    %c0_19 = arith.constant 0 : index
    %75 = vector.load %arg5[%74, %c0_19] : memref<128x32xf32, #tpu.memory_space<vmem>>, vector<1x32xf32>
    %76 = arith.index_cast %c3_i32 : i32 to index
    %c0_20 = arith.constant 0 : index
    %77 = vector.load %arg12[%76, %c0_20] : memref<8x32xf32, #tpu.memory_space<vmem>>, vector<1x32xf32>
    tpu.vector_store %arg12[%76, %c0_20], %75 {strides = array<i32>} : memref<8x32xf32, #tpu.memory_space<vmem>>, vector<1x32xf32>,
    %78 = arith.addi %0, %c3_i32 : i32
    %79 = arith.index_cast %78 : i32 to index
    %80 = memref.load %arg3[%79] : memref<8xi32, #tpu.memory_space<smem>>
    %81 = arith.index_cast %80 : i32 to index
    %c0_21 = arith.constant 0 : index
    %82 = vector.load %arg5[%81, %c0_21] : memref<128x32xf32, #tpu.memory_space<vmem>>, vector<1x32xf32>
    %83 = arith.index_cast %c3_i32 : i32 to index
    %c0_22 = arith.constant 0 : index
    %84 = vector.load %arg13[%83, %c0_22] : memref<8x32xf32, #tpu.memory_space<vmem>>, vector<1x32xf32>
    tpu.vector_store %arg13[%83, %c0_22], %82 {strides = array<i32>} : memref<8x32xf32, #tpu.memory_space<vmem>>, vector<1x32xf32>,
    %c4_i32 = arith.constant 4 : i32
    %85 = arith.addi %0, %c4_i32 : i32
    %86 = arith.index_cast %85 : i32 to index
    %87 = memref.load %arg1[%86] : memref<8xi32, #tpu.memory_space<smem>>
    %88 = arith.index_cast %87 : i32 to index
    %c0_23 = arith.constant 0 : index
    %89 = vector.load %arg4[%88, %c0_23] : memref<64x32xf32, #tpu.memory_space<vmem>>, vector<1x32xf32>
    %90 = arith.index_cast %c4_i32 : i32 to index
    %c0_24 = arith.constant 0 : index
    %91 = vector.load %arg11[%90, %c0_24] : memref<8x32xf32, #tpu.memory_space<vmem>>, vector<1x32xf32>
    tpu.vector_store %arg11[%90, %c0_24], %89 {strides = array<i32>} : memref<8x32xf32, #tpu.memory_space<vmem>>, vector<1x32xf32>,
    %92 = arith.addi %0, %c4_i32 : i32
    %93 = arith.index_cast %92 : i32 to index
    %94 = memref.load %arg2[%93] : memref<8xi32, #tpu.memory_space<smem>>
    %95 = arith.index_cast %94 : i32 to index
    %c0_25 = arith.constant 0 : index
    %96 = vector.load %arg5[%95, %c0_25] : memref<128x32xf32, #tpu.memory_space<vmem>>, vector<1x32xf32>
    %97 = arith.index_cast %c4_i32 : i32 to index
    %c0_26 = arith.constant 0 : index
    %98 = vector.load %arg12[%97, %c0_26] : memref<8x32xf32, #tpu.memory_space<vmem>>, vector<1x32xf32>
    tpu.vector_store %arg12[%97, %c0_26], %96 {strides = array<i32>} : memref<8x32xf32, #tpu.memory_space<vmem>>, vector<1x32xf32>,
    %99 = arith.addi %0, %c4_i32 : i32
    %100 = arith.index_cast %99 : i32 to index
    %101 = memref.load %arg3[%100] : memref<8xi32, #tpu.memory_space<smem>>
    %102 = arith.index_cast %101 : i32 to index
    %c0_27 = arith.constant 0 : index
    %103 = vector.load %arg5[%102, %c0_27] : memref<128x32xf32, #tpu.memory_space<vmem>>, vector<1x32xf32>
    %104 = arith.index_cast %c4_i32 : i32 to index
    %c0_28 = arith.constant 0 : index
    %105 = vector.load %arg13[%104, %c0_28] : memref<8x32xf32, #tpu.memory_space<vmem>>, vector<1x32xf32>
    tpu.vector_store %arg13[%104, %c0_28], %103 {strides = array<i32>} : memref<8x32xf32, #tpu.memory_space<vmem>>, vector<1x32xf32>,
    %c5_i32 = arith.constant 5 : i32
    %106 = arith.addi %0, %c5_i32 : i32
    %107 = arith.index_cast %106 : i32 to index
    %108 = memref.load %arg1[%107] : memref<8xi32, #tpu.memory_space<smem>>
    %109 = arith.index_cast %108 : i32 to index
    %c0_29 = arith.constant 0 : index
    %110 = vector.load %arg4[%109, %c0_29] : memref<64x32xf32, #tpu.memory_space<vmem>>, vector<1x32xf32>
    %111 = arith.index_cast %c5_i32 : i32 to index
    %c0_30 = arith.constant 0 : index
    %112 = vector.load %arg11[%111, %c0_30] : memref<8x32xf32, #tpu.memory_space<vmem>>, vector<1x32xf32>
    tpu.vector_store %arg11[%111, %c0_30], %110 {strides = array<i32>} : memref<8x32xf32, #tpu.memory_space<vmem>>, vector<1x32xf32>,
    %113 = arith.addi %0, %c5_i32 : i32
    %114 = arith.index_cast %113 : i32 to index
    %115 = memref.load %arg2[%114] : memref<8xi32, #tpu.memory_space<smem>>
    %116 = arith.index_cast %115 : i32 to index
    %c0_31 = arith.constant 0 : index
    %117 = vector.load %arg5[%116, %c0_31] : memref<128x32xf32, #tpu.memory_space<vmem>>, vector<1x32xf32>
    %118 = arith.index_cast %c5_i32 : i32 to index
    %c0_32 = arith.constant 0 : index
    %119 = vector.load %arg12[%118, %c0_32] : memref<8x32xf32, #tpu.memory_space<vmem>>, vector<1x32xf32>
    tpu.vector_store %arg12[%118, %c0_32], %117 {strides = array<i32>} : memref<8x32xf32, #tpu.memory_space<vmem>>, vector<1x32xf32>,
    %120 = arith.addi %0, %c5_i32 : i32
    %121 = arith.index_cast %120 : i32 to index
    %122 = memref.load %arg3[%121] : memref<8xi32, #tpu.memory_space<smem>>
    %123 = arith.index_cast %122 : i32 to index
    %c0_33 = arith.constant 0 : index
    %124 = vector.load %arg5[%123, %c0_33] : memref<128x32xf32, #tpu.memory_space<vmem>>, vector<1x32xf32>
    %125 = arith.index_cast %c5_i32 : i32 to index
    %c0_34 = arith.constant 0 : index
    %126 = vector.load %arg13[%125, %c0_34] : memref<8x32xf32, #tpu.memory_space<vmem>>, vector<1x32xf32>
    tpu.vector_store %arg13[%125, %c0_34], %124 {strides = array<i32>} : memref<8x32xf32, #tpu.memory_space<vmem>>, vector<1x32xf32>,
    %c6_i32 = arith.constant 6 : i32
    %127 = arith.addi %0, %c6_i32 : i32
    %128 = arith.index_cast %127 : i32 to index
    %129 = memref.load %arg1[%128] : memref<8xi32, #tpu.memory_space<smem>>
    %130 = arith.index_cast %129 : i32 to index
    %c0_35 = arith.constant 0 : index
    %131 = vector.load %arg4[%130, %c0_35] : memref<64x32xf32, #tpu.memory_space<vmem>>, vector<1x32xf32>
    %132 = arith.index_cast %c6_i32 : i32 to index
    %c0_36 = arith.constant 0 : index
    %133 = vector.load %arg11[%132, %c0_36] : memref<8x32xf32, #tpu.memory_space<vmem>>, vector<1x32xf32>
    tpu.vector_store %arg11[%132, %c0_36], %131 {strides = array<i32>} : memref<8x32xf32, #tpu.memory_space<vmem>>, vector<1x32xf32>,
    %134 = arith.addi %0, %c6_i32 : i32
    %135 = arith.index_cast %134 : i32 to index
    %136 = memref.load %arg2[%135] : memref<8xi32, #tpu.memory_space<smem>>
    %137 = arith.index_cast %136 : i32 to index
    %c0_37 = arith.constant 0 : index
    %138 = vector.load %arg5[%137, %c0_37] : memref<128x32xf32, #tpu.memory_space<vmem>>, vector<1x32xf32>
    %139 = arith.index_cast %c6_i32 : i32 to index
    %c0_38 = arith.constant 0 : index
    %140 = vector.load %arg12[%139, %c0_38] : memref<8x32xf32, #tpu.memory_space<vmem>>, vector<1x32xf32>
    tpu.vector_store %arg12[%139, %c0_38], %138 {strides = array<i32>} : memref<8x32xf32, #tpu.memory_space<vmem>>, vector<1x32xf32>,
    %141 = arith.addi %0, %c6_i32 : i32
    %142 = arith.index_cast %141 : i32 to index
    %143 = memref.load %arg3[%142] : memref<8xi32, #tpu.memory_space<smem>>
    %144 = arith.index_cast %143 : i32 to index
    %c0_39 = arith.constant 0 : index
    %145 = vector.load %arg5[%144, %c0_39] : memref<128x32xf32, #tpu.memory_space<vmem>>, vector<1x32xf32>
    %146 = arith.index_cast %c6_i32 : i32 to index
    %c0_40 = arith.constant 0 : index
    %147 = vector.load %arg13[%146, %c0_40] : memref<8x32xf32, #tpu.memory_space<vmem>>, vector<1x32xf32>
    tpu.vector_store %arg13[%146, %c0_40], %145 {strides = array<i32>} : memref<8x32xf32, #tpu.memory_space<vmem>>, vector<1x32xf32>,
    %c7_i32 = arith.constant 7 : i32
    %148 = arith.addi %0, %c7_i32 : i32
    %149 = arith.index_cast %148 : i32 to index
    %150 = memref.load %arg1[%149] : memref<8xi32, #tpu.memory_space<smem>>
    %151 = arith.index_cast %150 : i32 to index
    %c0_41 = arith.constant 0 : index
    %152 = vector.load %arg4[%151, %c0_41] : memref<64x32xf32, #tpu.memory_space<vmem>>, vector<1x32xf32>
    %153 = arith.index_cast %c7_i32 : i32 to index
    %c0_42 = arith.constant 0 : index
    %154 = vector.load %arg11[%153, %c0_42] : memref<8x32xf32, #tpu.memory_space<vmem>>, vector<1x32xf32>
    tpu.vector_store %arg11[%153, %c0_42], %152 {strides = array<i32>} : memref<8x32xf32, #tpu.memory_space<vmem>>, vector<1x32xf32>,
    %155 = arith.addi %0, %c7_i32 : i32
    %156 = arith.index_cast %155 : i32 to index
    %157 = memref.load %arg2[%156] : memref<8xi32, #tpu.memory_space<smem>>
    %158 = arith.index_cast %157 : i32 to index
    %c0_43 = arith.constant 0 : index
    %159 = vector.load %arg5[%158, %c0_43] : memref<128x32xf32, #tpu.memory_space<vmem>>, vector<1x32xf32>
    %160 = arith.index_cast %c7_i32 : i32 to index
    %c0_44 = arith.constant 0 : index
    %161 = vector.load %arg12[%160, %c0_44] : memref<8x32xf32, #tpu.memory_space<vmem>>, vector<1x32xf32>
    tpu.vector_store %arg12[%160, %c0_44], %159 {strides = array<i32>} : memref<8x32xf32, #tpu.memory_space<vmem>>, vector<1x32xf32>,
    %162 = arith.addi %0, %c7_i32 : i32
    %163 = arith.index_cast %162 : i32 to index
    %164 = memref.load %arg3[%163] : memref<8xi32, #tpu.memory_space<smem>>
    %165 = arith.index_cast %164 : i32 to index
    %c0_45 = arith.constant 0 : index
    %166 = vector.load %arg5[%165, %c0_45] : memref<128x32xf32, #tpu.memory_space<vmem>>, vector<1x32xf32>
    %167 = arith.index_cast %c7_i32 : i32 to index
    %c0_46 = arith.constant 0 : index
    %168 = vector.load %arg13[%167, %c0_46] : memref<8x32xf32, #tpu.memory_space<vmem>>, vector<1x32xf32>
    tpu.vector_store %arg13[%167, %c0_46], %166 {strides = array<i32>} : memref<8x32xf32, #tpu.memory_space<vmem>>, vector<1x32xf32>,
    %c8_i32_47 = arith.constant 8 : i32
    %c0_48 = arith.constant 0 : index
    %c0_49 = arith.constant 0 : index
    %169 = vector.load %arg11[%c0_48, %c0_49] : memref<8x32xf32, #tpu.memory_space<vmem>>, vector<8x32xf32>
    %c0_50 = arith.constant 0 : index
    %c0_51 = arith.constant 0 : index
    %170 = vector.load %arg6[%c0_50, %c0_51] : memref<32x3xf32, #tpu.memory_space<vmem>>, vector<32x3xf32>
    %c0_52 = arith.constant 0 : index
    %171 = memref.load %arg7[%c0_52] : memref<2xf32, #tpu.memory_space<smem>>
    %c1 = arith.constant 1 : index
    %172 = memref.load %arg7[%c1] : memref<2xf32, #tpu.memory_space<smem>>
    %c0_53 = arith.constant 0 : index
    %173 = memref.load %arg8[%c0_53] : memref<2xf32, #tpu.memory_space<smem>>
    %c1_54 = arith.constant 1 : index
    %174 = memref.load %arg8[%c1_54] : memref<2xf32, #tpu.memory_space<smem>>
    %c0_55 = arith.constant 0 : index
    %c0_56 = arith.constant 0 : index
    %175 = vector.load %arg12[%c0_55, %c0_56] : memref<8x32xf32, #tpu.memory_space<vmem>>, vector<8x32xf32>
    %176 = arith.mulf %169, %175 : vector<8x32xf32>
    %cst = arith.constant dense<0.000000e+00> : vector<8x3xf32>
    %177 = tpu.matmul %176, %170, %cst {dimension_numbers = #tpu.dot_dimension_numbers<[1], [0], [0], [1], [0, 0, 1, 1], [], []>} : vector<8x32xf32>, vector<32x3xf32>, vector<8x3xf32> -> vector<8x3xf32>
    %cst_57 = arith.constant 0.000000e+00 : f32
    %178 = vector.broadcast %cst_57 : f32 to vector<8x1xf32>
    %179 = vector.extract_strided_slice %177 {offsets = [0, 0], sizes = [8, 1], strides = [1, 1]} : vector<8x3xf32> to vector<8x1xf32>
    %180 = vector.broadcast %171 : f32 to vector<8x1xf32>
    %181 = arith.addf %179, %180 : vector<8x1xf32>
    %cst_58 = arith.constant 0.000000e+00 : f32
    %182 = vector.broadcast %cst_58 : f32 to vector<8x1xf32>
    %183 = arith.maximumf %181, %182 : vector<8x1xf32>
    %184 = vector.broadcast %173 : f32 to vector<8x1xf32>
    %185 = arith.mulf %183, %184 : vector<8x1xf32>
    %186 = arith.addf %178, %185 : vector<8x1xf32>
    %187 = vector.extract_strided_slice %177 {offsets = [0, 1], sizes = [8, 1], strides = [1, 1]} : vector<8x3xf32> to vector<8x1xf32>
    %188 = vector.broadcast %172 : f32 to vector<8x1xf32>
    %189 = arith.addf %187, %188 : vector<8x1xf32>
    %cst_59 = arith.constant 0.000000e+00 : f32
    %190 = vector.broadcast %cst_59 : f32 to vector<8x1xf32>
    %191 = arith.maximumf %189, %190 : vector<8x1xf32>
    %192 = vector.broadcast %174 : f32 to vector<8x1xf32>
    %193 = arith.mulf %191, %192 : vector<8x1xf32>
    %194 = arith.addf %186, %193 : vector<8x1xf32>
    %195 = vector.extract_strided_slice %177 {offsets = [0, 2], sizes = [8, 1], strides = [1, 1]} : vector<8x3xf32> to vector<8x1xf32>
    %196 = arith.mulf %194, %195 : vector<8x1xf32>
    %c0_60 = arith.constant 0 : index
    %c0_61 = arith.constant 0 : index
    %197 = vector.load %arg9[%c0_60, %c0_61] : memref<8x1xf32, #tpu.memory_space<vmem>>, vector<8x1xf32>
    tpu.vector_store %arg9[%c0_60, %c0_61], %196 {strides = array<i32>} : memref<8x1xf32, #tpu.memory_space<vmem>>, vector<8x1xf32>,
    %c0_62 = arith.constant 0 : index
    %c0_63 = arith.constant 0 : index
    %198 = vector.load %arg13[%c0_62, %c0_63] : memref<8x32xf32, #tpu.memory_space<vmem>>, vector<8x32xf32>
    %199 = arith.mulf %169, %198 : vector<8x32xf32>
    %cst_64 = arith.constant dense<0.000000e+00> : vector<8x3xf32>
    %200 = tpu.matmul %199, %170, %cst_64 {dimension_numbers = #tpu.dot_dimension_numbers<[1], [0], [0], [1], [0, 0, 1, 1], [], []>} : vector<8x32xf32>, vector<32x3xf32>, vector<8x3xf32> -> vector<8x3xf32>
    %cst_65 = arith.constant 0.000000e+00 : f32
    %201 = vector.broadcast %cst_65 : f32 to vector<8x1xf32>
    %202 = vector.extract_strided_slice %200 {offsets = [0, 0], sizes = [8, 1], strides = [1, 1]} : vector<8x3xf32> to vector<8x1xf32>
    %203 = vector.broadcast %171 : f32 to vector<8x1xf32>
    %204 = arith.addf %202, %203 : vector<8x1xf32>
    %cst_66 = arith.constant 0.000000e+00 : f32
    %205 = vector.broadcast %cst_66 : f32 to vector<8x1xf32>
    %206 = arith.maximumf %204, %205 : vector<8x1xf32>
    %207 = vector.broadcast %173 : f32 to vector<8x1xf32>
    %208 = arith.mulf %206, %207 : vector<8x1xf32>
    %209 = arith.addf %201, %208 : vector<8x1xf32>
    %210 = vector.extract_strided_slice %200 {offsets = [0, 1], sizes = [8, 1], strides = [1, 1]} : vector<8x3xf32> to vector<8x1xf32>
    %211 = vector.broadcast %172 : f32 to vector<8x1xf32>
    %212 = arith.addf %210, %211 : vector<8x1xf32>
    %cst_67 = arith.constant 0.000000e+00 : f32
    %213 = vector.broadcast %cst_67 : f32 to vector<8x1xf32>
    %214 = arith.maximumf %212, %213 : vector<8x1xf32>
    %215 = vector.broadcast %174 : f32 to vector<8x1xf32>
    %216 = arith.mulf %214, %215 : vector<8x1xf32>
    %217 = arith.addf %209, %216 : vector<8x1xf32>
    %218 = vector.extract_strided_slice %200 {offsets = [0, 2], sizes = [8, 1], strides = [1, 1]} : vector<8x3xf32> to vector<8x1xf32>
    %219 = arith.mulf %217, %218 : vector<8x1xf32>
    %c0_68 = arith.constant 0 : index
    %c0_69 = arith.constant 0 : index
    %220 = vector.load %arg10[%c0_68, %c0_69] : memref<8x1xf32, #tpu.memory_space<vmem>>, vector<8x1xf32>
    tpu.vector_store %arg10[%c0_68, %c0_69], %219 {strides = array<i32>} : memref<8x1xf32, #tpu.memory_space<vmem>>, vector<8x1xf32>,
    return
  }
  func.func @transform_0(%arg0: i32, %arg1: memref<8xi32, #tpu.memory_space<smem>>, %arg2: memref<8xi32, #tpu.memory_space<smem>>, %arg3: memref<8xi32, #tpu.memory_space<smem>>) -> (i32, i32) {
    %c0_i32 = arith.constant 0 : i32
    %c0_i32_0 = arith.constant 0 : i32
    %c0_i32_1 = arith.constant 0 : i32
    return %c0_i32, %c0_i32_0 : i32, i32
  }
  func.func @transform_1(%arg0: i32, %arg1: memref<8xi32, #tpu.memory_space<smem>>, %arg2: memref<8xi32, #tpu.memory_space<smem>>, %arg3: memref<8xi32, #tpu.memory_space<smem>>) -> (i32, i32) {
    %c0_i32 = arith.constant 0 : i32
    %c0_i32_0 = arith.constant 0 : i32
    %c0_i32_1 = arith.constant 0 : i32
    return %c0_i32, %c0_i32_0 : i32, i32
  }
  func.func @transform_2(%arg0: i32, %arg1: memref<8xi32, #tpu.memory_space<smem>>, %arg2: memref<8xi32, #tpu.memory_space<smem>>, %arg3: memref<8xi32, #tpu.memory_space<smem>>) -> (i32, i32) {
    %c0_i32 = arith.constant 0 : i32
    %c0_i32_0 = arith.constant 0 : i32
    %c0_i32_1 = arith.constant 0 : i32
    return %c0_i32, %c0_i32_0 : i32, i32
  }
  func.func @transform_3(%arg0: i32, %arg1: memref<8xi32, #tpu.memory_space<smem>>, %arg2: memref<8xi32, #tpu.memory_space<smem>>, %arg3: memref<8xi32, #tpu.memory_space<smem>>) -> i32 {
    %c0_i32 = arith.constant 0 : i32
    %c0_i32_0 = arith.constant 0 : i32
    return %c0_i32 : i32
  }
  func.func @transform_4(%arg0: i32, %arg1: memref<8xi32, #tpu.memory_space<smem>>, %arg2: memref<8xi32, #tpu.memory_space<smem>>, %arg3: memref<8xi32, #tpu.memory_space<smem>>) -> i32 {
    %c0_i32 = arith.constant 0 : i32
    %c0_i32_0 = arith.constant 0 : i32
    return %c0_i32 : i32
  }
  func.func @transform_5(%arg0: i32, %arg1: memref<8xi32, #tpu.memory_space<smem>>, %arg2: memref<8xi32, #tpu.memory_space<smem>>, %arg3: memref<8xi32, #tpu.memory_space<smem>>) -> (i32, i32) {
    %c0_i32 = arith.constant 0 : i32
    %c0_i32_0 = arith.constant 0 : i32
    return %arg0, %c0_i32 : i32, i32
  }
  func.func @transform_6(%arg0: i32, %arg1: memref<8xi32, #tpu.memory_space<smem>>, %arg2: memref<8xi32, #tpu.memory_space<smem>>, %arg3: memref<8xi32, #tpu.memory_space<smem>>) -> (i32, i32) {
    %c0_i32 = arith.constant 0 : i32
    %c0_i32_0 = arith.constant 0 : i32
    return %arg0, %c0_i32 : i32, i32
  }
}

</mosaic_0001>

<bundles_post_ra>
// kernel: tpu_custom_call.1
= control target key start
LH: loop header
LB: loop body
LE: loop exit
PB: predicated region body
PF: predicated region fallthrough
CT: control target
= control target key end

     0   :  { %s765_s0 = inlined_call_operand.vmem [shape: s32[8], index: 0, kind: input, shape index: {}]   ;;  %s766_s3 = inlined_call_operand.vmem [shape: f32[64,32], index: 3, kind: input, shape index: {}]   ;;  %s767_s4 = inlined_call_operand.vmem [shape: f32[128,32], index: 4, kind: input, shape index: {}]   ;;  %s768_s5 = inlined_call_operand.vmem [shape: f32[32,3], index: 5, kind: input, shape index: {}]   ;;  %s769_s6 = inlined_call_operand.vmem [shape: f32[2], index: 6, kind: input, shape index: {}]   ;;  %s770_s7 = inlined_call_operand.vmem [shape: f32[2], index: 7, kind: input, shape index: {}]   ;;  %s771_s8 = inlined_call_operand.vmem [shape: f32[8,1], index: 8, kind: output, shape index: {0}]   ;;  %s772_s9 = inlined_call_operand.vmem [shape: f32[8,1], index: 9, kind: output, shape index: {1}]   ;;  %s773_s1 = inlined_call_operand.vmem [shape: s32[8], index: 1, kind: input, shape index: {}]   ;;  %s774_s2 = inlined_call_operand.vmem [shape: s32[8], index: 2, kind: input, shape index: {}]  }
   0x1   :  { %s15_s11 = sshll.u32 %s765_s0, 4  ;;  %s19_s14 = sshll.u32 %s773_s1, 4  ;;  %s16_s11 = int_to_ptr.vmem [resolvable:$true] %s15_s11  ;;  %s20_s14 = int_to_ptr.vmem [resolvable:$true] %s19_s14 }
   0x2   :  { %s483_s15 = scalar_lea.vmem %s16_s11, 16  ;;  %p488_p1 = scmp.lt.s32.totalorder %s16_s11, %s16_s11 }
   0x3   :  { %p484_p0 = scmp.ne.s32.totalorder %s16_s11, %s483_s15  ;;  %p489_p2 = scmp.lt.s32.totalorder %s483_s15, %s483_s15 }
   0x5   :  { %p490_p3 = por %p489_p2, %p488_p1 }
   0x7   :  { %p491_p4 = pnand %p490_p3, %p484_p0 }
   0x9   :  { %494 = shalt.err (!%p491_p4)  }
   0xa   :  { %s549_s16 = smov [#allocation6]   ;;  %s495_s17 = scalar_lea.vmem %s20_s14, 16 }
   0xb   :  { %18 = dma.vmem_to_smem %s16_s11, 16, %s549_s16, [#allocation5] }
   0xc   :  { %p496_p5 = scmp.ne.s32.totalorder %s20_s14, %s495_s17  ;;  %p500_p6 = scmp.lt.s32.totalorder %s20_s14, %s20_s14 }
   0xd   :  { %p501_p7 = scmp.lt.s32.totalorder %s495_s17, %s495_s17 }
   0xf   :  { %p502_p8 = por %p501_p7, %p500_p6 }
  0x11   :  { %p503_p9 = pnand %p502_p8, %p496_p5 }
  0x13   :  { %506 = shalt.err (!%p503_p9)  }
  0x14   :  { %s550_s0 = smov [#allocation7]   ;;  %s23_s19 = sshll.u32 %s774_s2, 4  ;;  %s24_s19 = int_to_ptr.vmem [resolvable:$true] %s23_s19 }
  0x15   :  { %22 = dma.vmem_to_smem %s20_s14, 16, %s550_s0, [#allocation5] }
  0x16   :  { %s507_s20 = scalar_lea.vmem %s24_s19, 16  ;;  %p512_p11 = scmp.lt.s32.totalorder %s24_s19, %s24_s19 }
  0x17   :  { %p508_p10 = scmp.ne.s32.totalorder %s24_s19, %s507_s20  ;;  %p513_p12 = scmp.lt.s32.totalorder %s507_s20, %s507_s20 }
  0x19   :  { %p514_p13 = por %p513_p12, %p512_p11 }
  0x1b   :  { %p515_p0 = pnand %p514_p13, %p508_p10 }
  0x1d   :  { %518 = shalt.err (!%p515_p0)  }
  0x1e   :  { %s551_s21 = smov [#allocation8]  }
  0x1f   :  { %26 = dma.vmem_to_smem %s24_s19, 16, %s551_s21, [#allocation5] }
  0x20   :  { %543 = dma.done.wait [#allocation5], 48 }
  0x21   :  { %544 = vsyncadd [#allocation5], 4294967248 }
  0x22   :  { %28 = sfence }
  0x23   :  { %29 = vsyncpa [#allocation10], 0  ;;  %s43_s24 = sshll.u32 %s769_s6, 4  ;;  %s44_s24 = int_to_ptr.vmem [resolvable:$true] %s43_s24 }
  0x24   :  { %30 = vsyncpa [#allocation12], 0  ;;  %s53_s26 = sshll.u32 %s770_s7, 4  ;;  %s519_s27 = scalar_lea.vmem %s44_s24, 16  ;;  %s54_s26 = int_to_ptr.vmem [resolvable:$true] %s53_s26 }
  0x25   :  { %p520_p1 = scmp.ne.s32.totalorder %s44_s24, %s519_s27  ;;  %p524_p2 = scmp.lt.s32.totalorder %s44_s24, %s44_s24 }
  0x26   :  { %p525_p3 = scmp.lt.s32.totalorder %s519_s27, %s519_s27 }
  0x28   :  { %p526_p4 = por %p525_p3, %p524_p2 }
  0x2a   :  { %p527_p5 = pnand %p526_p4, %p520_p1 }
  0x2c   :  { %530 = shalt.err (!%p527_p5)
}
  0x2d   :  { %s552_s28 = smov [#allocation9]   ;;  %s531_s29 = scalar_lea.vmem %s54_s26, 16 }
  0x2e   :  { %46 = dma.vmem_to_smem %s44_s24, 16, %s552_s28, [#allocation10]  }
  0x2f   :  { %p532_p6 = scmp.ne.s32.totalorder %s54_s26, %s531_s29  ;;  %p536_p7 = scmp.lt.s32.totalorder %s54_s26, %s54_s26 }
  0x30   :  { %p537_p8 = scmp.lt.s32.totalorder %s531_s29, %s531_s29 }
  0x32   :  { %p538_p9 = por %p537_p8, %p536_p7 }
  0x34   :  { %p539_p10 = pnand %p538_p9, %p532_p6 }
  0x36   :  { %542 = shalt.err (!%p539_p10)
}
  0x37   :  { %s553_s6 = smov [#allocation11]  }
  0x38   :  { %56 = dma.vmem_to_smem %s54_s26, 16, %s553_s6, [#allocation12]  }
  0x39   :  { %545 = dma.done.wait [#allocation10], 16  }
  0x3a   :  { %546 = vsyncadd [#allocation10], 4294967280 }
  0x3b   :  { %547 = dma.done.wait [#allocation12], 16  }
  0x3c   :  { %548 = vsyncadd [#allocation12], 4294967280 }
  0x3d   :  { %63 = sfence }
  0x3e   :  { %v170_v0 = vld [vmem:[%s768_s5] sm:$0xff]  ;;  %v171_v1 = vld [vmem:[%s768_s5 + $0x8] sm:$0xff]  ;;  %v172_v2 = vld [vmem:[%s768_s5 + $0x10] sm:$0xff]  ;;  %v554_v3 = vmov 0.0|0.0   ;;  %s65_s16 = sld [smem:[#allocation6]]  ;;  %vm555_vm0 = vmmov 0  }
  0x3f   :  { %461 = vmatprep.subr.bf16.mxu0 %v554_v3  ;;  %v462_v4 = vpack.c.bf16 %v171_v1, %v170_v0  ;;  %467 = vmatprep.subr.bf16.mxu1 %v554_v3  ;;  %v173_v5 = vld [vmem:[%s768_s5 + $0x18] sm:$0xff]  ;;  %s70_s17 = sld [smem:[#allocation7]]  ;;  %v556_v6 = vmov 0.0   ;;  %s404_s0 = sld [smem:[#allocation6 + $0x1]]  ;;  %vm68_vm1 = vcmask 253952   ;;  %vm180_vm2 = vcmask 261120  }
  0x40   :  { %447 = vmatprep.mubr.msk.f32.mxu0 %vm555_vm0, %v556_v6  ;;  %s405_s1 = sld [smem:[#allocation7 + $0x1]]  ;;  %458 = vmatprep.mubr.msk.f32.mxu1 %vm555_vm0, %v556_v6  ;;  %v465_v7 = vpack.c.bf16 %v173_v5, %v172_v2  ;;  %s407_s18 = sld [smem:[#allocation6 + $0x2]]  ;;  %vm275_vm3 = vcmask 7168  }
  0x41   :  { %463 = vmatpush3.bf16.msra.mxu0 %v462_v4  ;;  %469 = vmatpush3.bf16.msra.mxu1 %v462_v4  ;;  %s408_s19 = sld [smem:[#allocation7 + $0x2]]  ;;  %s636_s20 = sld [smem:[#allocation6 + $0x3]] }
  0x42   :  { %464 = vmatprep.subr.bf16.mxu0 %v554_v3  ;;  %470 = vmatprep.subr.bf16.mxu1 %v554_v3  ;;  %s638_s21 = sld [smem:[#allocation7 + $0x3]]  ;;  %s640_s5 = sld [smem:[#allocation6 + $0x4]] }
  0x43   :  { %s642_s22 = sld [smem:[#allocation7 + $0x4]]  ;;  %s644_s23 = sld [smem:[#allocation6 + $0x5]] }
  0x44   :  { %s646_s24 = sld [smem:[#allocation7 + $0x5]]  ;;  %s66_s26 = scalar_lea.vmem %s766_s3, %s65_s16 }
  0x45   :  { %466 = vmatpush3.bf16.msra.mxu0 %v465_v7  ;;  %s71_s29 = scalar_lea.vmem %s767_s4, %s70_s17  ;;  %472 = vmatpush3.bf16.msra.mxu1 %v465_v7  ;;  %v67_v8 = vld [vmem:[%s66_s26] sm:$0x1]  ;;  %s80_s30 = scalar_lea.vmem %s766_s3, %s404_s0 }
  0x46   :  { %v72_v9 = vld [vmem:[%s71_s29] sm:$0x1]  ;;  %s84_s12 = scalar_lea.vmem %s767_s4, %s405_s1  ;;  %69 = vst.msk [vmem:[#allocation2] sm:$0x1] %vm68_vm1, %v67_v8  ;;  %s93_s15 = scalar_lea.vmem %s766_s3, %s407_s18 }
  0x47   :  { %73 = vst.msk [vmem:[#allocation3] sm:$0x1] %vm68_vm1, %v72_v9  ;;  %v81_v10 = vld [vmem:[%s80_s30] sm:$0x1]  ;;  %s97_s0 = scalar_lea.vmem %s767_s4, %s408_s19  ;;  %s106_s25 = scalar_lea.vmem %s766_s3, %s636_s20 }
  0x48   :  { %v85_v11 = vld [vmem:[%s84_s12] sm:$0x1]  ;;  %82 = vst.msk [vmem:[#allocation2 + $0x1] sm:$0x1] %vm68_vm1, %v81_v10  ;;  %s110_s18 = scalar_lea.vmem %s767_s4, %s638_s21  ;;  %s119_s29 = scalar_lea.vmem %s766_s3, %s640_s5 }
  0x49   :  { %86 = vst.msk [vmem:[#allocation3 + $0x1] sm:$0x1] %vm68_vm1, %v85_v11  ;;  %v94_v12 = vld [vmem:[%s93_s15] sm:$0x1]  ;;  %s123_s30 = scalar_lea.vmem %s767_s4, %s642_s22  ;;  %s132_s10 = scalar_lea.vmem %s766_s3, %s644_s23 }
  0x4a   :  { %v98_v13 = vld [vmem:[%s97_s0] sm:$0x1]  ;;  %95 = vst.msk [vmem:[#allocation2 + $0x2] sm:$0x1] %vm68_vm1, %v94_v12  ;;  %s136_s13 = scalar_lea.vmem %s767_s4, %s646_s24  ;;  %s419_s5 = sld [smem:[#allocation6 + $0x6]] }
  0x4b   :  { %99 = vst.msk [vmem:[#allocation3 + $0x2] sm:$0x1] %vm68_vm1, %v98_v13  ;;  %v107_v14 = vld [vmem:[%s106_s25] sm:$0x1]  ;;  %s420_s22 = sld [smem:[#allocation7 + $0x6]]  ;;  %s422_s14 = sld [smem:[#allocation6 + $0x7]] }
  0x4c   :  { %v111_v15 = vld [vmem:[%s110_s18] sm:$0x1]  ;;  %108 = vst.msk [vmem:[#allocation2 + $0x3] sm:$0x1] %vm68_vm1, %v107_v14  ;;  %s423_s15 = sld [smem:[#allocation7 + $0x7]]  ;;  %s74_s16 = sld [smem:[#allocation8]] }
  0x4d   :  { %112 = vst.msk [vmem:[#allocation3 + $0x3] sm:$0x1] %vm68_vm1, %v111_v15  ;;  %v120_v16 = vld [vmem:[%s119_s29] sm:$0x1]  ;;  %s406_s23 = sld [smem:[#allocation8 + $0x1]]  ;;  %s409_s17 = sld [smem:[#allocation8 + $0x2]] }
  0x4e   :  { %v124_v17 = vld [vmem:[%s123_s30] sm:$0x1]  ;;  %121 = vst.msk [vmem:[#allocation2 + $0x4] sm:$0x1] %vm68_vm1, %v120_v16  ;;  %s412_s0 = sld [smem:[#allocation8 + $0x3]]  ;;  %s415_s1 = sld [smem:[#allocation8 + $0x4]] }
  0x4f   :  { %125 = vst.msk [vmem:[#allocation3 + $0x4] sm:$0x1] %vm68_vm1, %v124_v17  ;;  %v133_v18 = vld [vmem:[%s132_s10] sm:$0x1]  ;;  %s702_s24 = sld [smem:[#allocation8 + $0x5]]  ;;  %s704_s2 = sld [smem:[#allocation8 + $0x6]] }
  0x50   :  { %v137_v19 = vld [vmem:[%s136_s13] sm:$0x1]  ;;  %134 = vst.msk [vmem:[#allocation2 + $0x5] sm:$0x1] %vm68_vm1, %v133_v18  ;;  %s145_s27 = scalar_lea.vmem %s766_s3, %s419_s5  ;;  %s709_s18 = sld [smem:[#allocation8 + $0x7]] }
  0x51   :  { %138 = vst.msk [vmem:[#allocation3 + $0x5] sm:$0x1] %vm68_vm1, %v137_v19  ;;  %v146_v20 = vld [vmem:[%s145_s27] sm:$0x1]  ;;  %s149_s29 = scalar_lea.vmem %s767_s4, %s420_s22  ;;  %s158_s30 = scalar_lea.vmem %s766_s3, %s422_s14 }
  0x52   :  { %147 = vst.msk [vmem:[#allocation2 + $0x6] sm:$0x1] %vm68_vm1, %v146_v20  ;;  %v150_v21 = vld [vmem:[%s149_s29] sm:$0x1]  ;;  %s162_s10 = scalar_lea.vmem %s767_s4, %s423_s15  ;;  %s75_s13 = scalar_lea.vmem %s767_s4, %s74_s16 }
  0x53   :  { %v159_v22 = vld [vmem:[%s158_s30] sm:$0x1]  ;;  %151 = vst.msk [vmem:[#allocation3 + $0x6] sm:$0x1] %vm68_vm1, %v150_v21  ;;  %s88_s22 = scalar_lea.vmem %s767_s4, %s406_s23  ;;  %s101_s15 = scalar_lea.vmem %s767_s4, %s409_s17 }
  0x54   :  { %160 = vst.msk [vmem:[#allocation2 + $0x7] sm:$0x1] %vm68_vm1, %v159_v22  ;;  %v163_v23 = vld [vmem:[%s162_s10] sm:$0x1]  ;;  %s114_s27 = scalar_lea.vmem %s767_s4, %s412_s0  ;;  %s127_s29 = scalar_lea.vmem %s767_s4, %s415_s1 }
  0x55   :  { %v76_v24 = vld [vmem:[%s75_s13] sm:$0x1]  ;;  %164 = vst.msk [vmem:[#allocation3 + $0x7] sm:$0x1] %vm68_vm1, %v163_v23  ;;  %s140_s6 = scalar_lea.vmem %s767_s4, %s702_s24  ;;  %s153_s20 = scalar_lea.vmem %s767_s4, %s704_s2 }
  0x56   :  { %77 = vst.msk [vmem:[#allocation4] sm:$0x1] %vm68_vm1, %v76_v24  ;;  %v89_v25 = vld [vmem:[%s88_s22] sm:$0x1]  ;;  %s166_s21 = scalar_lea.vmem %s767_s4, %s709_s18  ;;  %s425_s24 = sld [smem:[#allocation9 + $0x1]] }
  0x57   :  { %v102_v26 = vld [vmem:[%s101_s15] sm:$0x1]  ;;  %90 = vst.msk [vmem:[#allocation4 + $0x1] sm:$0x1] %vm68_vm1, %v89_v25  ;;  %s426_s2 = sld [smem:[#allocation11 + $0x1]]  ;;  %s557_s4 = smov 126  }
  0x58   :  { %103 = vst.msk [vmem:[#allocation4 + $0x2] sm:$0x1] %vm68_vm1, %v102_v26  ;;  %v115_v27 = vld [vmem:[%s114_s27] sm:$0x1]  ;;  %s558_s18 = smov 127   ;;  %s174_s10 = sld [smem:[#allocation9]] }
  0x59   :  { %v128_v28 = vld [vmem:[%s127_s29] sm:$0x1]  ;;  %116 = vst.msk [vmem:[#allocation4 + $0x3] sm:$0x1] %vm68_vm1, %v115_v27  ;;  %s176_s11 = sld [smem:[#allocation11]] }
  0x5a   :  { %129 = vst.msk [vmem:[#allocation4 + $0x4] sm:$0x1] %vm68_vm1, %v128_v28  ;;  %v141_v29 = vld [vmem:[%s140_s6] sm:$0x1] }
  0x5b   :  { %v154_v30 = vld [vmem:[%s153_s20] sm:$0x1]  ;;  %142 = vst.msk [vmem:[#allocation4 + $0x5] sm:$0x1] %vm68_vm1, %v141_v29 }
  0x5c   :  { %155 = vst.msk [vmem:[#allocation4 + $0x6] sm:$0x1] %vm68_vm1, %v154_v30  ;;  %v167_v31 = vld [vmem:[%s166_s21] sm:$0x1]  ;;  %v178_v33 = vld [vmem:[#allocation3] sm:$0xff]  ;;  %v260_v37 = vstv %s425_s24 }
  0x5d   :  { %168 = vst.msk [vmem:[#allocation4 + $0x7] sm:$0x1] %vm68_vm1, %v167_v31  ;;  %v169_v32 = vld [vmem:[#allocation2] sm:$0xff]  ;;  %v263_v41 = vstv %s426_s2 }
  0x5e   :  { %v179_v34 = vmul.f32 %v178_v33, %v169_v32  ;;  %v254_v49 = vstv %s174_s10 }
  0x5f   :  { %v257_v53 = vstv %s176_s11 }
  0x60   :  { %448 = vmatmul.mubr.msk.f32.vlgmr.msra.gmra.mrb[0].mxu0 %vm180_vm2, %v179_v34 }
  0x64   :  { %v277_v35 = vld [vmem:[#allocation4] sm:$0xff] }
  0x65   :  { %v278_v36 = vmul.f32 %v277_v35, %v169_v32 }
  0x67   :  { %459 = vmatmul.mubr.msk.f32.vlgmr.msra.gmra.mrb[0].mxu1 %vm180_vm2, %v278_v36 }
 0x133   :  { %v250_v38 = vpop.f32.mrb[0].mxu0 }
 0x134   :  { %v261_v39 = vadd.f32 %v260_v37, %v250_v38  ;;  %271 = vrot.lane.b32.xlu1 %v250_v38, %s557_s4  ;;  %v449_v40 = vpop.f32.mrb[1].mxu0  ;;  %v255_v50 = vadd.f32 %v254_v49, %v250_v38 }
 0x136   :  { %v262_v42 = vmax.f32 %v261_v39, 0.0  ;;  %v256_v51 = vmax.f32 %v255_v50, 0.0 }
 0x138   :  { %v264_v46 = vmul.f32 %v263_v41, %v262_v42  ;;  %v258_v55 = vmul.f32 %v257_v53, %v256_v51 }
 0x13a   :  { %v348_v43 = vpop.f32.mrb[0].mxu1  ;;  %266 = vrot.lane.b32.xlu0 %v264_v46, %s558_s18 }
 0x13b   :  { %v356_v44 = vadd.f32 %v348_v43, %v260_v37  ;;  %v460_v45 = vpop.f32.mrb[1].mxu1  ;;  %365 = vrot.lane.b32.xlu1 %v348_v43, %s557_s4  ;;  %v352_v52 = vadd.f32 %v348_v43, %v254_v49 }
 0x13d   :  { %v357_v47 = vmax.f32 %v356_v44, 0.0  ;;  %v353_v54 = vmax.f32 %v352_v52, 0.0 }
 0x13f   :  { %v358_v48 = vmul.f32 %v357_v47, %v263_v41  ;;  %v354_v60 = vmul.f32 %v353_v54, %v257_v53 }
 0x141   :  { %360 = vrot.lane.b32.xlu0 %v358_v48, %s558_s18 }
 0x1a6   :  { %v272_v56 = vpop.permute.xlu1 %271 }
 0x1ac   :  { %v267_v57 = vpop.permute.xlu0 %266 }
 0x1ad   :  { %v269_v58 = vadd.f32 %v267_v57, %v258_v55  ;;  %v366_v63 = vpop.permute.xlu1 %365 }
 0x1af   :  { %v274_v59 = vmul.f32 %v272_v56, %v269_v58 }
 0x1b1   :  { %276 = vst.msk [vmem:[%s771_s8] sm:$0xff] %vm275_vm3, %v274_v59 }
 0x1b3   :  { %v361_v61 = vpop.permute.xlu0 %360 }
 0x1b4   :  { %v363_v62 = vadd.f32 %v361_v61, %v354_v60 }
 0x1b6   :  { %v368_v0 = vmul.f32 %v366_v63, %v363_v62 }
 0x1b8   :  { %369 = vst.msk [vmem:[%s772_s9] sm:$0xff] %vm275_vm3, %v368_v0 }
 0x1b9   :  { %378 = vsyncpa [#allocation10], 1 }
 0x1ba   :  { %379 = vsyncpa [#allocation12], 1 }

</bundles_post_ra>
